<compile_context>
chip_gen: v6e
topology: v6e:2x2x1
jax: 0.10.0
libtpu: 0.0.40
codegen_flags: <defaults>
</compile_context>

<pallas_src>
import jax
import jax.numpy as jnp
from jax.experimental import pallas as pl
from jax.experimental.pallas import tpu as pltpu


# Rows of the (HW, C) slab reduced per (unrolled, trace-time) step; bounds the
# size of the transient f32 x^2 chunk to _SUMSQ_CHUNK * C * 4 bytes.
_SUMSQ_CHUNK = 512


def _grn_kernel(x_ref, gamma_ref, beta_ref, o_ref):
    # x_ref / o_ref: (HW, C) tile for one batch element (batch dim squeezed).
    # gamma_ref / beta_ref: (1, C).
    HW, C = x_ref.shape

    # ---- Pass 1: per-channel sum of squares over the spatial axis, f32 acc.
    # Chunked so we never hold a full (HW, C) f32 temp in VMEM.
    acc = jnp.zeros((1, C), jnp.float32)
    for start in range(0, HW, _SUMSQ_CHUNK):          # static, unrolled at trace
        size = min(_SUMSQ_CHUNK, HW - start)
        xi = x_ref[start:start + size, :].astype(jnp.float32)
        acc = acc + jnp.sum(xi * xi, axis=0, keepdims=True)

    gx = jnp.sqrt(acc)                                   # (1, C)  ||x||_2 per channel
    denom = jnp.mean(gx, axis=-1, keepdims=True) + 1e-6  # (1, 1)
    nx = gx * (1.0 / denom)                              # (1, C)  one divide per step

    # ---- Fused per-channel scale:
    #   gamma * (x * Nx) + beta + x  ==  x * (gamma * Nx + 1) + beta
    gamma = gamma_ref[...].astype(jnp.float32)           # (1, C)
    scale = (gamma * nx + 1.0).astype(x_ref.dtype)       # (1, C)
    beta = beta_ref[...].astype(x_ref.dtype)             # (1, C)

    # ---- Apply in storage dtype: 1 mul + 1 add per element on the big slab.
    o_ref[...] = x_ref[...] * scale + beta


def grn_pallas(x, gamma, beta):
    """x: (N, H, W, C); gamma, beta: (1, 1, 1, C). Returns (N, H, W, C)."""
    N, H, W, C = x.shape
    HW = H * W
    x_flat = x.reshape(N, HW, C)
    gamma_flat = gamma.reshape(1, C)
    beta_flat = beta.reshape(1, C)

    out_flat = pl.pallas_call(
        _grn_kernel,
        out_shape=jax.ShapeDtypeStruct((N, HW, C), x.dtype),
        grid_spec=pltpu.PrefetchScalarGridSpec(
            num_scalar_prefetch=0,
            grid=(N,),
            in_specs=[
                pl.BlockSpec((pl.Squeezed(), HW, C), lambda n: (n, 0, 0)),
                pl.BlockSpec((1, C), lambda n: (0, 0)),
                pl.BlockSpec((1, C), lambda n: (0, 0)),
            ],
            out_specs=pl.BlockSpec((pl.Squeezed(), HW, C), lambda n: (n, 0, 0)),
        ),
        compiler_params=pltpu.CompilerParams(
            dimension_semantics=("parallel",),
            vmem_limit_bytes=48 * 1024 * 1024,
        ),
    )(x_flat, gamma_flat, beta_flat)

    return out_flat.reshape(N, H, W, C)


def grn_reference(x, gamma, beta):
    """Pure-JAX reference mirroring the PyTorch forward (NHWC)."""
    gx = jnp.sqrt(jnp.sum(x.astype(jnp.float32) ** 2, axis=(1, 2), keepdims=True))
    nx = gx / (jnp.mean(gx, axis=-1, keepdims=True) + 1e-6)
    return gamma * (x * nx) + beta + x


if __name__ == "__main__":
    key = jax.random.PRNGKey(0)
    kx, kg, kb = jax.random.split(key, 3)

    # Lane-dense small test shape: C = 128 (one full lane group), HW = 256.
    N, H, W, C = 2, 16, 16, 128
    x = jax.random.normal(kx, (N, H, W, C), dtype=jnp.float32)

    # nn.Parameter(torch.zeros(1,1,1,dim)) in __init__ — use small non-zero
    # values so the full compute path is exercised (with zeros GRN degenerates
    # to identity).
    gamma = 0.1 * jax.random.normal(kg, (1, 1, 1, C), dtype=jnp.float32)
    beta = 0.1 * jax.random.normal(kb, (1, 1, 1, C), dtype=jnp.float32)

    out = grn_pallas(x, gamma, beta)
    out = jax.block_until_ready(out)

    ref = grn_reference(x, gamma, beta)
    assert out.shape == ref.shape
    assert jnp.allclose(out, ref, atol=1e-5, rtol=1e-5), (
        f"max abs err = {jnp.max(jnp.abs(out - ref))}"
    )

    print("KERNEL_OK")
</pallas_src>

<mosaic_0001>
module attributes {stable_mosaic.version = 11 : i64} {
  func.func @_grn_kernel(%arg0: i32, %arg1: memref<1x256x128xf32, #tpu.memory_space<vmem>>, %arg2: memref<1x128xf32, #tpu.memory_space<vmem>>, %arg3: memref<1x128xf32, #tpu.memory_space<vmem>>, %arg4: memref<1x256x128xf32, #tpu.memory_space<vmem>>) attributes {dimension_semantics = [#tpu.dimension_semantics<parallel>], iteration_bounds = array<i64: 2>, scalar_prefetch = 0 : i64, scratch_operands = 0 : i64, tpu.core_type = #tpu.core_type<tc>, window_params = [{transform_indices = @transform_0, window_bounds = array<i64: 1, 256, 128>}, {pipeline_mode = #tpu.pipeline_mode<synchronous>, transform_indices = @transform_1, window_bounds = array<i64: 1, 128>}, {pipeline_mode = #tpu.pipeline_mode<synchronous>, transform_indices = @transform_2, window_bounds = array<i64: 1, 128>}, {transform_indices = @transform_3, window_bounds = array<i64: 1, 256, 128>}]} {
    %cst = arith.constant 0.000000e+00 : f32
    %0 = vector.broadcast %cst : f32 to vector<1x128xf32>
    %c0 = arith.constant 0 : index
    %c0_0 = arith.constant 0 : index
    %c0_1 = arith.constant 0 : index
    %1 = vector.load %arg1[%c0, %c0_0, %c0_1] : memref<1x256x128xf32, #tpu.memory_space<vmem>>, vector<1x256x128xf32>
    %2 = vector.shape_cast %1 : vector<1x256x128xf32> to vector<256x128xf32>
    %3 = arith.mulf %2, %2 : vector<256x128xf32>
    %cst_2 = arith.constant dense<0.000000e+00> : vector<128xf32>
    %4 = vector.multi_reduction <add>, %3, %cst_2 [0] : vector<256x128xf32> to vector<128xf32>
    %5 = vector.shape_cast %4 : vector<128xf32> to vector<1x128xf32>
    %6 = arith.addf %0, %5 : vector<1x128xf32>
    %7 = math.sqrt %6 : vector<1x128xf32>
    %cst_3 = arith.constant dense<0.000000e+00> : vector<1xf32>
    %8 = vector.multi_reduction <add>, %7, %cst_3 [1] : vector<1x128xf32> to vector<1xf32>
    %9 = vector.shape_cast %8 : vector<1xf32> to vector<1x1xf32>
    %cst_4 = arith.constant 1.280000e+02 : f32
    %10 = vector.broadcast %cst_4 : f32 to vector<1x1xf32>
    %11 = arith.divf %9, %10 : vector<1x1xf32>
    %cst_5 = arith.constant 9.99999997E-7 : f32
    %12 = vector.broadcast %cst_5 : f32 to vector<1x1xf32>
    %13 = arith.addf %11, %12 : vector<1x1xf32>
    %cst_6 = arith.constant 1.000000e+00 : f32
    %14 = vector.broadcast %cst_6 : f32 to vector<1x1xf32>
    %15 = arith.divf %14, %13 : vector<1x1xf32>
    %16 = vector.broadcast %15 : vector<1x1xf32> to vector<1x128xf32>
    %17 = arith.mulf %7, %16 : vector<1x128xf32>
    %c0_7 = arith.constant 0 : index
    %c0_8 = arith.constant 0 : index
    %18 = vector.load %arg2[%c0_7, %c0_8] : memref<1x128xf32, #tpu.memory_space<vmem>>, vector<1x128xf32>
    %19 = arith.mulf %18, %17 : vector<1x128xf32>
    %cst_9 = arith.constant 1.000000e+00 : f32
    %20 = vector.broadcast %cst_9 : f32 to vector<1x128xf32>
    %21 = arith.addf %19, %20 : vector<1x128xf32>
    %c0_10 = arith.constant 0 : index
    %c0_11 = arith.constant 0 : index
    %22 = vector.load %arg3[%c0_10, %c0_11] : memref<1x128xf32, #tpu.memory_space<vmem>>, vector<1x128xf32>
    %c0_12 = arith.constant 0 : index
    %c0_13 = arith.constant 0 : index
    %c0_14 = arith.constant 0 : index
    %23 = vector.load %arg1[%c0_12, %c0_13, %c0_14] : memref<1x256x128xf32, #tpu.memory_space<vmem>>, vector<1x256x128xf32>
    %24 = vector.shape_cast %23 : vector<1x256x128xf32> to vector<256x128xf32>
    %25 = vector.broadcast %21 : vector<1x128xf32> to vector<256x128xf32>
    %26 = arith.mulf %24, %25 : vector<256x128xf32>
    %27 = vector.broadcast %22 : vector<1x128xf32> to vector<256x128xf32>
    %28 = arith.addf %26, %27 : vector<256x128xf32>
    %c0_15 = arith.constant 0 : index
    %c0_16 = arith.constant 0 : index
    %c0_17 = arith.constant 0 : index
    %29 = vector.load %arg4[%c0_15, %c0_16, %c0_17] : memref<1x256x128xf32, #tpu.memory_space<vmem>>, vector<1x256x128xf32>
    %30 = vector.shape_cast %29 : vector<1x256x128xf32> to vector<256x128xf32>
    %31 = vector.shape_cast %28 : vector<256x128xf32> to vector<1x256x128xf32>
    tpu.vector_store %arg4[%c0_15, %c0_16, %c0_17], %31 {strides = array<i32>} : memref<1x256x128xf32, #tpu.memory_space<vmem>>, vector<1x256x128xf32>,
    return
  }
  func.func @transform_0(%arg0: i32) -> (i32, i32, i32) {
    %c0_i32 = arith.constant 0 : i32
    %c0_i32_0 = arith.constant 0 : i32
    %c0_i32_1 = arith.constant 0 : i32
    return %arg0, %c0_i32, %c0_i32_0 : i32, i32, i32
  }
  func.func @transform_1(%arg0: i32) -> (i32, i32) {
    %c0_i32 = arith.constant 0 : i32
    %c0_i32_0 = arith.constant 0 : i32
    %c0_i32_1 = arith.constant 0 : i32
    return %c0_i32, %c0_i32_0 : i32, i32
  }
  func.func @transform_2(%arg0: i32) -> (i32, i32) {
    %c0_i32 = arith.constant 0 : i32
    %c0_i32_0 = arith.constant 0 : i32
    %c0_i32_1 = arith.constant 0 : i32
    return %c0_i32, %c0_i32_0 : i32, i32
  }
  func.func @transform_3(%arg0: i32) -> (i32, i32, i32) {
    %c0_i32 = arith.constant 0 : i32
    %c0_i32_0 = arith.constant 0 : i32
    %c0_i32_1 = arith.constant 0 : i32
    return %arg0, %c0_i32, %c0_i32_0 : i32, i32, i32
  }
}

</mosaic_0001>

<bundles_post_ra>
// kernel: tpu_custom_call.1
= control target key start
LH: loop header
LB: loop body
LE: loop exit
PB: predicated region body
PF: predicated region fallthrough
CT: control target
= control target key end

     0   :  { %8 = vsyncpa [#allocation3], 0  ;;  %s1123_s0 = inlined_call_operand.hbm [shape: f32[2,256,128], index: 0, kind: input, shape index: {}]   ;;  %s1124_s1 = inlined_call_operand.vmem [shape: f32[1,128], index: 1, kind: input, shape index: {}]   ;;  %s1125_s2 = inlined_call_operand.vmem [shape: f32[1,128], index: 2, kind: input, shape index: {}]   ;;  %s1126_s3 = inlined_call_operand.hbm [shape: f32[2,256,128], index: 3, kind: output, shape index: {}]  }
   0x1   :  { %10 = vsyncpa [#allocation3 + $0x1], 0 }
   0x2   :  { %11 = vsyncpa [#allocation4], 0 }
   0x3   :  { %13 = vsyncpa [#allocation4 + $0x1], 0  ;;  %s696_s12 = smov 0   ;;  %s698_s13 = smov 0  }
   0x4   :  { %s700_s14 = smov 0   ;;  %s702_s15 = smov 0  }
   0x5 LB: > { %s717_s16 = sadd.s32 4294967295, %s668_s15   ;;  %s505_s17 = sadd.s32 4294967294, %s668_s15   ;;  %s668_s15 = sphi %s702_s15, %s1141_s15   ;;  %s664_s14 = sphi %s700_s14, %s1140_s14   ;;  %s660_s13 = sphi %s698_s13, %s1139_s13   ;;  %s656_s12 = sphi %s696_s12, %s1138_s12  }
   0x6   : > { %s721_s18 = sadd.s32 1, %s668_s15   ;;  %s26_s19 = sadd.s32 1, %s664_s14 }
   0x7   : > { %s23_s20 = ssub.s32 %s668_s15, %s721_s18  ;;  %p33_p0 = scmp.ne.s32.totalorder %s664_s14, %s660_s13 }
   0x8   : > { %p24_p1 = scmp.eq.s32.totalorder %s23_s20, 0  ;;  %p34_p2 = scmp.eq.s32.totalorder %s668_s15, 0 }
   0x9   : > { %p39_p3 = scmp.ne.s32.totalorder %s660_s13, %s656_s12  ;;  %p40_p4 = scmp.eq.s32.totalorder %s717_s16, 0 }
   0xa   : > { %s733_s21 = scalar_select %p24_p1, %s664_s14, %s26_s19  }
   0xb   : > { %p735_p5 = por %p34_p2, %p33_p0  ;;  %p739_p6 = por %p40_p4, %p39_p3 }
   0xc   : > { %p105_p7 = scmp.eq.s32.totalorder %s717_s16, 1  ;;  %p111_p8 = scmp.eq.s32.totalorder %s505_s17, 1 }
   0xd   : > { %s1130_s23 = scalar_select %p739_p6, 1, 0 }
   0xe   : > { %p534_p10 = scmp.lt.s32.totalorder %s668_s15, 2  ;;  %p746_p11 = por %p105_p7, %p33_p0 }
   0xf   : > { %p750_p12 = por %p111_p8, %p39_p3  ;;  %s137_s26 = sand.u32 1, %s664_s14  }
  0x10   : > { %s1131_s24 = scalar_select %p746_p11, 1, 0 }
  0x11   : > { %s1132_s25 = scalar_select %p750_p12, 1, 0 }
  0x12   : > { %s520_s27 = sshll.u32 %s668_s15, 12  ;;  %s508_s28 = sshll.u32 %s137_s26, 8 }
  0x13   : > { %s759_s4 = scalar_lea.hbm %s1123_s0, %s520_s27  ;;  %s141_s5 = scalar_lea.vmem [#allocation2], %s508_s28 }
  0x14   : > { %s148_s6 = sshll.u32 %s141_s5, 4  ;;  %p763_p13 = pnand %p534_p10, %p735_p5  ;;  %s767_s6 = int_to_ptr.vmem [resolvable:$true] %s148_s6 }
  0x15   : > { %s769_s8 = scalar_lea.sflag [#allocation3], %s137_s26  ;;  %s576_s9 = scalar_lea.hbm %s759_s4, 4096 }
  0x16   : > { %p577_p0 = scmp.ne.s32.totalorder %s759_s4, %s576_s9  ;;  %p578_p1 = pneg %p763_p13 }
  0x17   : > { %s581_s17 = scalar_lea.hbm %s1123_s0, 8192  ;;  %p582_p4 = scmp.lt.s32.totalorder %s759_s4, %s1123_s0 }
  0x18   : > { %p579_p2 = pnand %p578_p1, %p577_p0  ;;  %p583_p5 = scmp.lt.s32.totalorder %s581_s17, %s576_s9 }
  0x1a   : > { %p580_p3 = pneg %p579_p2  ;;  %p584_p7 = por %p583_p5, %p582_p4 }
  0x1c   : > { %p585_p8 = pnand %p584_p7, %p580_p3 }
  0x1e   : > { %588 = shalt.err (!%p585_p8)
}
  0x1f   : > { %s589_s22 = scalar_lea.vmem %s767_s6, 4096  ;;  %s670_s26 = smov [#allocation2]  }
  0x20   : > { %p590_p10 = scmp.ne.s32.totalorder %s767_s6, %s589_s22  ;;  %s594_s27 = sshll.u32 %s670_s26, 4  ;;  %s595_s27 = int_to_ptr.vmem [resolvable:$false] %s594_s27 }
  0x21   : > { %s596_s28 = scalar_lea.vmem %s595_s27, 8192  ;;  %p597_p2 = scmp.lt.s32.totalorder %s767_s6, %s595_s27 }
  0x22   : > { %p592_p9 = pnand %p590_p10, %p578_p1  ;;  %p598_p12 = scmp.lt.s32.totalorder %s596_s28, %s589_s22 }
  0x24   : > { %p593_p0 = pneg %p592_p9  ;;  %p599_p11 = por %p598_p12, %p597_p2 }
  0x26   : > { %p600_p6 = pnand %p599_p11, %p593_p0 }
  0x28   : > { %603 = shalt.err (!%p600_p6)
}
  0x29   : > { %s671_s29 = smov 128   ;;  %s672_s30 = smov 8  }
  0x2a   : > { %529 = dma.hbm_to_vmem [thread:$0]  (!%p763_p13), %s759_s4, 4096, %s767_s6, %s769_s8, %s671_s29, %s671_s29, %s672_s30  }
  0x2b   : > { %p511_p9 = scmp.ge.s32.totalorder %s668_s15, 1  ;;  %p156_p1 = scmp.lt.s32.totalorder %s668_s15, 3 }
  0x2d   : > { %p157_p3 = pnand %p511_p9, %p156_p1 }
  0x2e   : > { %s793_s5 = sand.u32 (!%p157_p3), 1, %s660_s13   ;;  %p1134_p6 = scmp.ne.s32.totalorder (!%p157_p3), %s1130_s23, 0 }
  0x2f   : > { %160 = sbr.rel (%p157_p3) target bundleno = 352 (0x160), region = 32  ;;  %s512_s9 = sshll.u32 (!%p157_p3), %s793_s5, 8 }
  0x30   : > { %s163_s10 = scalar_lea.sflag (!%p157_p3), [#allocation3], %s793_s5  ;;  %s799_s11 = scalar_lea.vmem (!%p157_p3), [#allocation2], %s512_s9 }
  0x34   : > { %647 = dma.done.wait (%p1134_p6), %s163_s10, 4096  }
  0x35   : > { %649 = vsyncadd (%p1134_p6), %s163_s10, 4294963200  ;;  %v806_v0 = vld [vmem:[%s799_s11] sm:$0xff]  ;;  %v809_v1 = vld [vmem:[%s799_s11 + $0x8] sm:$0xff]  ;;  %s1019_s8 = scalar_lea.vmem [#allocation5], %s512_s9  ;;  %s521_s17 = sshll.u32 %s717_s16, 12 }
  0x36   : > { %v812_v2 = vld [vmem:[%s799_s11 + $0x10] sm:$0xff]  ;;  %v815_v3 = vld [vmem:[%s799_s11 + $0x18] sm:$0xff]  ;;  %v221_v4 = vmul.f32 %v806_v0, %v806_v0  ;;  %v222_v5 = vmul.f32 %v809_v1, %v809_v1  ;;  %v824_v7 = vld [vmem:[%s799_s11 + $0x20] sm:$0xff]  ;;  %s432_s19 = sshll.u32 %s1019_s8, 4  ;;  %s1062_s22 = scalar_lea.hbm %s1126_s3, %s521_s17  ;;  %s1064_s19 = int_to_ptr.vmem [resolvable:$true] %s432_s19 }
  0x37   : > { %v223_v6 = vmul.f32 %v812_v2, %v812_v2  ;;  %v224_v8 = vmul.f32 %v815_v3, %v815_v3  ;;  %v829_v10 = vld [vmem:[%s799_s11 + $0x28] sm:$0xff]  ;;  %v225_v11 = vmul.f32 %v824_v7, %v824_v7  ;;  %v834_v13 = vld [vmem:[%s799_s11 + $0x30] sm:$0xff]  ;;  %v839_v16 = vld [vmem:[%s799_s11 + $0x38] sm:$0xff]  ;;  %s419_s26 = scalar_lea.sflag [#allocation4], %s793_s5  ;;  %s604_s27 = scalar_lea.vmem %s1064_s19, 4096 }
  0x38   : > { %v253_v9 = vadd.f32 %v222_v5, %v221_v4  ;;  %v226_v14 = vmul.f32 %v829_v10, %v829_v10  ;;  %v227_v17 = vmul.f32 %v834_v13, %v834_v13  ;;  %v844_v19 = vld [vmem:[%s799_s11 + $0x40] sm:$0xff]  ;;  %v228_v20 = vmul.f32 %v839_v16, %v839_v16  ;;  %v849_v22 = vld [vmem:[%s799_s11 + $0x48] sm:$0xff]  ;;  %v854_v25 = vld [vmem:[%s799_s11 + $0x50] sm:$0xff]  ;;  %p605_p11 = scmp.ne.s32.totalorder %s1064_s19, %s604_s27  ;;  %p1135_p12 = scmp.ne.s32.totalorder %s1131_s24, 0 }
  0x39   : > { %v229_v23 = vmul.f32 %v844_v19, %v844_v19  ;;  %v230_v26 = vmul.f32 %v849_v22, %v849_v22  ;;  %v859_v28 = vld [vmem:[%s799_s11 + $0x58] sm:$0xff]  ;;  %v231_v29 = vmul.f32 %v854_v25, %v854_v25  ;;  %v864_v31 = vld [vmem:[%s799_s11 + $0x60] sm:$0xff]  ;;  %v869_v34 = vld [vmem:[%s799_s11 + $0x68] sm:$0xff]  ;;  %s673_s28 = smov [#allocation5]  }
  0x3a   : > { %v254_v12 = vadd.f32 %v253_v9, %v223_v6  ;;  %v232_v32 = vmul.f32 %v859_v28, %v859_v28  ;;  %v233_v35 = vmul.f32 %v864_v31, %v864_v31  ;;  %v874_v37 = vld [vmem:[%s799_s11 + $0x70] sm:$0xff]  ;;  %v234_v38 = vmul.f32 %v869_v34, %v869_v34  ;;  %v879_v40 = vld [vmem:[%s799_s11 + $0x78] sm:$0xff]  ;;  %v884_v43 = vld [vmem:[%s799_s11 + $0x80] sm:$0xff]  ;;  %p606_p13 = pnand %p605_p11, %p1135_p12  ;;  %s608_s29 = sshll.u32 %s673_s28, 4  ;;  %s609_s29 = int_to_ptr.vmem [resolvable:$false] %s608_s29 }
  0x3b   : > { %v235_v41 = vmul.f32 %v874_v37, %v874_v37  ;;  %v236_v44 = vmul.f32 %v879_v40, %v879_v40  ;;  %v889_v46 = vld [vmem:[%s799_s11 + $0x88] sm:$0xff]  ;;  %v237_v47 = vmul.f32 %v884_v43, %v884_v43  ;;  %v894_v49 = vld [vmem:[%s799_s11 + $0x90] sm:$0xff]  ;;  %v899_v52 = vld [vmem:[%s799_s11 + $0x98] sm:$0xff]  ;;  %s610_s30 = scalar_lea.vmem %s609_s29, 8192  ;;  %p611_p5 = scmp.lt.s32.totalorder %s1064_s19, %s609_s29 }
  0x3c   : > { %v255_v15 = vadd.f32 %v254_v12, %v224_v8  ;;  %v238_v50 = vmul.f32 %v889_v46, %v889_v46  ;;  %v239_v53 = vmul.f32 %v894_v49, %v894_v49  ;;  %v904_v55 = vld [vmem:[%s799_s11 + $0xa0] sm:$0xff]  ;;  %v240_v56 = vmul.f32 %v899_v52, %v899_v52  ;;  %v909_v58 = vld [vmem:[%s799_s11 + $0xa8] sm:$0xff]  ;;  %v914_v61 = vld [vmem:[%s799_s11 + $0xb0] sm:$0xff]  ;;  %p607_p4 = pneg %p606_p13  ;;  %p612_p7 = scmp.lt.s32.totalorder %s610_s30, %s604_s27 }
  0x3d   : > { %v241_v59 = vmul.f32 %v904_v55, %v904_v55  ;;  %v242_v62 = vmul.f32 %v909_v58, %v909_v58  ;;  %v919_v4 = vld [vmem:[%s799_s11 + $0xb8] sm:$0xff]  ;;  %v243_v5 = vmul.f32 %v914_v61, %v914_v61  ;;  %v924_v8 = vld [vmem:[%s799_s11 + $0xc0] sm:$0xff]  ;;  %v929_v12 = vld [vmem:[%s799_s11 + $0xc8] sm:$0xff] }
  0x3e   : > { %v256_v18 = vadd.f32 %v255_v15, %v225_v11  ;;  %v244_v9 = vmul.f32 %v919_v4, %v919_v4  ;;  %p613_p8 = por %p612_p7, %p611_p5 }
  0x40   : > { %v257_v21 = vadd.f32 %v256_v18, %v226_v14  ;;  %v245_v14 = vmul.f32 %v924_v8, %v924_v8  ;;  %v246_v18 = vmul.f32 %v929_v12, %v929_v12  ;;  %p614_p10 = pnand %p613_p8, %p607_p4 }
  0x42   : > { %v258_v24 = vadd.f32 %v257_v21, %v227_v17  ;;  %v934_v17 = vld [vmem:[%s799_s11 + $0xd0] sm:$0xff]  ;;  %v939_v21 = vld [vmem:[%s799_s11 + $0xd8] sm:$0xff] }
  0x44   : > { %v259_v27 = vadd.f32 %v258_v24, %v228_v20 }
  0x46   : > { %v260_v30 = vadd.f32 %v259_v27, %v229_v23  ;;  %v247_v23 = vmul.f32 %v934_v17, %v934_v17  ;;  %v248_v27 = vmul.f32 %v939_v21, %v939_v21 }
  0x48   : > { %v261_v33 = vadd.f32 %v260_v30, %v230_v26  ;;  %v944_v26 = vld [vmem:[%s799_s11 + $0xe0] sm:$0xff]  ;;  %v949_v30 = vld [vmem:[%s799_s11 + $0xe8] sm:$0xff] }
  0x4a   : > { %v262_v36 = vadd.f32 %v261_v33, %v231_v29 }
  0x4c   : > { %v263_v39 = vadd.f32 %v262_v36, %v232_v32  ;;  %v249_v32 = vmul.f32 %v944_v26, %v944_v26  ;;  %v250_v36 = vmul.f32 %v949_v30, %v949_v30 }
  0x4e   : > { %v264_v42 = vadd.f32 %v263_v39, %v233_v35  ;;  %v954_v35 = vld [vmem:[%s799_s11 + $0xf0] sm:$0xff]  ;;  %v959_v39 = vld [vmem:[%s799_s11 + $0xf8] sm:$0xff] }
  0x50   : > { %v265_v45 = vadd.f32 %v264_v42, %v234_v38 }
  0x52   : > { %v266_v48 = vadd.f32 %v265_v45, %v235_v41  ;;  %v251_v41 = vmul.f32 %v954_v35, %v954_v35 }
  0x54   : > { %v267_v51 = vadd.f32 %v266_v48, %v236_v44  ;;  %v252_v44 = vmul.f32 %v959_v39, %v959_v39 }
  0x56   : > { %v268_v54 = vadd.f32 %v267_v51, %v237_v47 }
  0x58   : > { %v269_v57 = vadd.f32 %v268_v54, %v238_v50 }
  0x5a   : > { %v270_v60 = vadd.f32 %v269_v57, %v239_v53 }
  0x5c   : > { %v271_v63 = vadd.f32 %v270_v60, %v240_v56 }
  0x5e   : > { %v272_v6 = vadd.f32 %v271_v63, %v241_v59 }
  0x60   : > { %v273_v11 = vadd.f32 %v272_v6, %v242_v62 }
  0x62   : > { %v274_v15 = vadd.f32 %v273_v11, %v243_v5 }
  0x64   : > { %v275_v20 = vadd.f32 %v274_v15, %v244_v9 }
  0x66   : > { %v276_v24 = vadd.f32 %v275_v20, %v245_v14  ;;  %v311_v14 = vlaneseq  ;;  %v306_v20 = vld [vmem:[%s1124_s1] sm:$0x1] }
  0x68   : > { %v277_v29 = vadd.f32 %v276_v24, %v246_v18  ;;  %v312_v15 = vshrl.u32 %v311_v14, 7 }
  0x6a   : > { %v278_v33 = vadd.f32 %v277_v29, %v247_v23 }
  0x6c   : > { %v279_v38 = vadd.f32 %v278_v33, %v248_v27  ;;  %v313_v27 = vsub.s32 0, %v312_v15 }
  0x6e   : > { %v280_v42 = vadd.f32 %v279_v38, %v249_v32 }
  0x70   : > { %v281_v45 = vadd.f32 %v280_v42, %v250_v36 }
  0x72   : > { %v282_v47 = vadd.f32 %v281_v45, %v251_v41 }
  0x74   : > { %v283_v48 = vadd.f32 %v282_v47, %v252_v44 }
  0x76   : > { %v284_v50 = vrot.slane %v283_v48, 4 }
  0x78   : > { %v285_v51 = vadd.f32 %v284_v50, %v283_v48 }
  0x7a   : > { %v286_v53 = vrot.slane %v285_v51, 2 }
  0x7c   : > { %v287_v54 = vadd.f32 %v286_v53, %v285_v51 }
  0x7e   : > { %v288_v56 = vrot.slane %v287_v54, 1 }
  0x80   : > { %v289_v57 = vadd.f32 %v288_v56, %v287_v54 }
  0x82   : > { %572 = vrsqrt.f32 %v289_v57  ;;  %vm293_vm0 = vcmp.eq.f32.partialorder %v289_v57, inf  ;;  %v296_v60 = vand.u32 2147483648, %v289_v57  ;;  %vm295_vm1 = vcmp.eq.f32.partialorder %v289_v57, 0.0 }
  0x8f   : > { %v573_v59 = vpop.eup %572 }
  0x90   : > { %v292_v62 = vmul.f32 %v573_v59, %v289_v57 }
  0x92   : > { %v294_v63 = vsel %vm293_vm0, %v289_v57, %v292_v62 }
  0x93   : > { %v297_v5 = vsel %vm295_vm1, %v296_v60, %v294_v63 }
  0x94   : > { %298 = vadd.xlane.f32.xlu0 %v297_v5 }
 0x11d   : > { %v299_v6 = vpop.xlane.xlu0 %298 }
 0x11e   : > { %v301_v9 = vmul.f32 0.0078125, %v299_v6 }
 0x120   : > { %v302_v11 = vadd.f32 1e-06, %v301_v9 }
 0x122   : > { %574 = vrcp.f32 %v302_v11 }
 0x12f   : > { %v575_v18 = vpop.eup %574 }
 0x130   : > { %v305_v23 = vmul.f32 %v575_v18, %v297_v5 }
 0x132   : > { %v307_v24 = vmul.f32 %v306_v20, %v305_v23 }
 0x134   : > { %v308_v29 = vadd.f32 1.0, %v307_v24 }
 0x136   : > { %v314_v32 = vrot.slane %v308_v29, %v313_v27 }
 0x138   : > { %v316_v33 = vmul.f32 %v314_v32, %v806_v0  ;;  %v317_v36 = vmul.f32 %v314_v32, %v809_v1  ;;  %v318_v38 = vmul.f32 %v314_v32, %v812_v2  ;;  %v319_v41 = vmul.f32 %v314_v32, %v815_v3 }
 0x139   : > { %v320_v42 = vmul.f32 %v314_v32, %v824_v7  ;;  %v321_v44 = vmul.f32 %v314_v32, %v829_v10  ;;  %v322_v45 = vmul.f32 %v314_v32, %v834_v13  ;;  %v323_v47 = vmul.f32 %v314_v32, %v839_v16 }
 0x13a   : > { %v324_v48 = vmul.f32 %v314_v32, %v844_v19  ;;  %v325_v50 = vmul.f32 %v314_v32, %v849_v22  ;;  %v326_v0 = vmul.f32 %v314_v32, %v854_v25  ;;  %v327_v1 = vmul.f32 %v314_v32, %v859_v28  ;;  %v991_v25 = vld [vmem:[%s1125_s2] ss:$0 sm:$0xff] }
 0x13b   : > { %v328_v2 = vmul.f32 %v314_v32, %v864_v31  ;;  %v329_v3 = vmul.f32 %v314_v32, %v869_v34  ;;  %v330_v7 = vmul.f32 %v314_v32, %v874_v37  ;;  %v331_v10 = vmul.f32 %v314_v32, %v879_v40 }
 0x13c   : > { %v332_v13 = vmul.f32 %v314_v32, %v884_v43  ;;  %v333_v16 = vmul.f32 %v314_v32, %v889_v46  ;;  %v334_v19 = vmul.f32 %v314_v32, %v894_v49  ;;  %v335_v22 = vmul.f32 %v314_v32, %v899_v52 }
 0x13d   : > { %v336_v28 = vmul.f32 %v314_v32, %v904_v55  ;;  %v337_v31 = vmul.f32 %v314_v32, %v909_v58  ;;  %v338_v34 = vmul.f32 %v314_v32, %v914_v61  ;;  %v339_v37 = vmul.f32 %v314_v32, %v919_v4 }
 0x13e   : > { %v340_v40 = vmul.f32 %v314_v32, %v924_v8  ;;  %v341_v43 = vmul.f32 %v314_v32, %v929_v12  ;;  %v342_v46 = vmul.f32 %v314_v32, %v934_v17  ;;  %v343_v49 = vmul.f32 %v314_v32, %v939_v21 }
 0x13f   : > { %v344_v52 = vmul.f32 %v314_v32, %v944_v26  ;;  %v345_v51 = vmul.f32 %v314_v32, %v949_v30  ;;  %v346_v55 = vmul.f32 %v314_v32, %v954_v35  ;;  %v347_v58 = vmul.f32 %v314_v32, %v959_v39 }
 0x140   : > { %v354_v61 = vadd.f32 %v991_v25, %v316_v33  ;;  %v355_v4 = vadd.f32 %v991_v25, %v317_v36  ;;  %v356_v8 = vadd.f32 %v991_v25, %v318_v38  ;;  %v357_v12 = vadd.f32 %v991_v25, %v319_v41 }
 0x141   : > { %v358_v17 = vadd.f32 %v991_v25, %v320_v42  ;;  %v359_v21 = vadd.f32 %v991_v25, %v321_v44  ;;  %v360_v26 = vadd.f32 %v991_v25, %v322_v45  ;;  %v361_v30 = vadd.f32 %v991_v25, %v323_v47 }
 0x142   : > { %v362_v35 = vadd.f32 %v991_v25, %v324_v48  ;;  %v363_v39 = vadd.f32 %v991_v25, %v325_v50  ;;  %v364_v53 = vadd.f32 %v991_v25, %v326_v0  ;;  %v365_v54 = vadd.f32 %v991_v25, %v327_v1  ;;  %386 = vst [vmem:[%s1019_s8] sm:$0xff] %v354_v61 }
 0x143   : > { %387 = vst [vmem:[%s1019_s8 + $0x8] sm:$0xff] %v355_v4  ;;  %388 = vst [vmem:[%s1019_s8 + $0x10] sm:$0xff] %v356_v8  ;;  %v366_v56 = vadd.f32 %v991_v25, %v328_v2  ;;  %v367_v57 = vadd.f32 %v991_v25, %v329_v3  ;;  %v368_v59 = vadd.f32 %v991_v25, %v330_v7 }
 0x144   : > { %389 = vst [vmem:[%s1019_s8 + $0x18] sm:$0xff] %v357_v12  ;;  %v369_v60 = vadd.f32 %v991_v25, %v331_v10  ;;  %390 = vst [vmem:[%s1019_s8 + $0x20] sm:$0xff] %v358_v17  ;;  %v370_v62 = vadd.f32 %v991_v25, %v332_v13  ;;  %v371_v63 = vadd.f32 %v991_v25, %v333_v16 }
 0x145   : > { %391 = vst [vmem:[%s1019_s8 + $0x28] sm:$0xff] %v359_v21  ;;  %392 = vst [vmem:[%s1019_s8 + $0x30] sm:$0xff] %v360_v26  ;;  %v372_v5 = vadd.f32 %v991_v25, %v334_v19  ;;  %v373_v6 = vadd.f32 %v991_v25, %v335_v22  ;;  %v374_v9 = vadd.f32 %v991_v25, %v336_v28 }
 0x146   : > { %393 = vst [vmem:[%s1019_s8 + $0x38] sm:$0xff] %v361_v30  ;;  %394 = vst [vmem:[%s1019_s8 + $0x40] sm:$0xff] %v362_v35  ;;  %v375_v11 = vadd.f32 %v991_v25, %v337_v31  ;;  %v376_v14 = vadd.f32 %v991_v25, %v338_v34  ;;  %v377_v15 = vadd.f32 %v991_v25, %v339_v37 }
 0x147   : > { %395 = vst [vmem:[%s1019_s8 + $0x48] sm:$0xff] %v363_v39  ;;  %396 = vst [vmem:[%s1019_s8 + $0x50] sm:$0xff] %v364_v53  ;;  %v378_v18 = vadd.f32 %v991_v25, %v340_v40  ;;  %v379_v20 = vadd.f32 %v991_v25, %v341_v43  ;;  %v380_v23 = vadd.f32 %v991_v25, %v342_v46 }
 0x148   : > { %397 = vst [vmem:[%s1019_s8 + $0x58] sm:$0xff] %v365_v54  ;;  %398 = vst [vmem:[%s1019_s8 + $0x60] sm:$0xff] %v366_v56  ;;  %v381_v24 = vadd.f32 %v991_v25, %v343_v49  ;;  %v382_v27 = vadd.f32 %v991_v25, %v344_v52  ;;  %v383_v29 = vadd.f32 %v991_v25, %v345_v51 }
 0x149   : > { %399 = vst [vmem:[%s1019_s8 + $0x68] sm:$0xff] %v367_v57  ;;  %400 = vst [vmem:[%s1019_s8 + $0x70] sm:$0xff] %v368_v59  ;;  %v384_v32 = vadd.f32 %v991_v25, %v346_v55  ;;  %v385_v33 = vadd.f32 %v991_v25, %v347_v58 }
 0x14a   : > { %401 = vst [vmem:[%s1019_s8 + $0x78] sm:$0xff] %v369_v60  ;;  %402 = vst [vmem:[%s1019_s8 + $0x80] sm:$0xff] %v370_v62 }
 0x14b   : > { %403 = vst [vmem:[%s1019_s8 + $0x88] sm:$0xff] %v371_v63  ;;  %404 = vst [vmem:[%s1019_s8 + $0x90] sm:$0xff] %v372_v5 }
 0x14c   : > { %405 = vst [vmem:[%s1019_s8 + $0x98] sm:$0xff] %v373_v6  ;;  %406 = vst [vmem:[%s1019_s8 + $0xa0] sm:$0xff] %v374_v9 }
 0x14d   : > { %407 = vst [vmem:[%s1019_s8 + $0xa8] sm:$0xff] %v375_v11  ;;  %408 = vst [vmem:[%s1019_s8 + $0xb0] sm:$0xff] %v376_v14 }
 0x14e   : > { %409 = vst [vmem:[%s1019_s8 + $0xb8] sm:$0xff] %v377_v15  ;;  %410 = vst [vmem:[%s1019_s8 + $0xc0] sm:$0xff] %v378_v18 }
 0x14f   : > { %411 = vst [vmem:[%s1019_s8 + $0xc8] sm:$0xff] %v379_v20  ;;  %412 = vst [vmem:[%s1019_s8 + $0xd0] sm:$0xff] %v380_v23 }
 0x150   : > { %413 = vst [vmem:[%s1019_s8 + $0xd8] sm:$0xff] %v381_v24  ;;  %414 = vst [vmem:[%s1019_s8 + $0xe0] sm:$0xff] %v382_v27 }
 0x151   : > { %415 = vst [vmem:[%s1019_s8 + $0xe8] sm:$0xff] %v383_v29  ;;  %416 = vst [vmem:[%s1019_s8 + $0xf0] sm:$0xff] %v384_v32 }
 0x152   : > { %417 = vst [vmem:[%s1019_s8 + $0xf8] sm:$0xff] %v385_v33 }
 0x153   : > { %617 = shalt.err (!%p614_p10)
}
 0x154   : > { %s618_s9 = scalar_lea.hbm %s1062_s22, 4096  ;;  %s622_s23 = scalar_lea.hbm %s1126_s3, 8192 }
 0x155   : > { %p619_p0 = scmp.ne.s32.totalorder %s1062_s22, %s618_s9  ;;  %p623_p1 = scmp.lt.s32.totalorder %s1062_s22, %s1126_s3 }
 0x156   : > { %p624_p3 = scmp.lt.s32.totalorder %s622_s23, %s618_s9 }
 0x157   : > { %p620_p2 = pnand %p619_p0, %p1135_p12 }
 0x158   : > { %p625_p6 = por %p624_p3, %p623_p1 }
 0x159   : > { %p621_p9 = pneg %p620_p2 }
 0x15b   : > { %p626_p11 = pnand %p625_p6, %p621_p9 }
 0x15d   : > { %629 = shalt.err (!%p626_p11)
}
 0x15e   : > { %s674_s7 = smov 128   ;;  %s675_s8 = smov 8  }
 0x15f   : > { %524 = dma.vmem_to_hbm [thread:$0]  (%p1135_p12), %s1064_s19, 4096, %s1062_s22, %s419_s26, %s674_s7, %s674_s7, %s675_s8  }
 0x160 PF: > { %s447_s17 = sand.u32 1, %s656_s12   ;;  %p1136_p13 = scmp.ne.s32.totalorder %s1132_s25, 0 }
 0x161   : > { %p1137_p4 = scmp.ge.s32.totalorder %s668_s15, 2  ;;  %s448_s16 = scalar_lea.sflag [#allocation4], %s447_s17 }
 0x163   : > { %p531_p5 = pnand %p1137_p4, %p1136_p13 }
 0x165   : > { %p532_p7 = pneg %p531_p5 }
 0x167   : > { %651 = dma.done.wait (%p532_p7), %s448_s16, 4096  }
 0x168   : > { %653 = vsyncadd (%p532_p7), %s448_s16, 4294963200  ;;  %p16_p8 = scmp.ge.s32.totalorder %s721_s18, 4   ;;  %s1138_s12 = smov %s660_s13 }
 0x169   : > { %s1139_s13 = smov %s664_s14  ;;  %s1140_s14 = smov %s733_s21 }
 0x16a   : > { %s1141_s15 = smov %s721_s18  ;;  %18 = sbr.rel (!%p16_p8) target bundleno = 5 (0x5), region = 77 }
 0x16f   :  { %453 = vsyncpa [#allocation3], 1 }
 0x170   :  { %455 = vsyncpa [#allocation3 + $0x1], 1 }
 0x171   :  { %456 = vsyncpa [#allocation4], 1 }
 0x172   :  { %458 = vsyncpa [#allocation4 + $0x1], 1 }

</bundles_post_ra>
